<compile_context>
chip_gen: v7x
topology: tpu7x:2x2x1
jax: 0.10.0
libtpu: 0.0.40
codegen_flags: <defaults>
</compile_context>

<pallas_src>
import functools

import jax
import jax.numpy as jnp
import numpy as np
from jax import lax
from jax.experimental import pallas as pl
from jax.experimental.pallas import tpu as pltpu


# --------------------------------------------------------------------------
# Kernels
# --------------------------------------------------------------------------

def _gln_fused_kernel(x_ref, w_ref, b_ref, o_ref, *, eps, count):
    """Single-pass gLN: Bn whole samples resident in VMEM (true extents)."""
    x = x_ref[...].astype(jnp.float32)                       # (Bn, C, S)
    inv_cnt = 1.0 / float(count)

    # Pass 1: per-sample mean over (C, S).
    mean = jnp.sum(jnp.sum(x, axis=2, keepdims=True),
                   axis=1, keepdims=True) * inv_cnt           # (Bn, 1, 1)

    # Pass 2: centered variance (two-pass, matches PyTorch numerics).  No mask,
    # no padding; xc is reused by the epilogue.
    xc = x - mean
    var = jnp.sum(jnp.sum(xc * xc, axis=2, keepdims=True),
                  axis=1, keepdims=True) * inv_cnt             # (Bn, 1, 1)
    inv = 1.0 / jnp.sqrt(var + eps)                            # per-sample

    # Fused epilogue: y = (x - mean) * (w * inv) + b   (2 VPU ops / element).
    scale = w_ref[...].astype(jnp.float32) * inv               # (Bn, C, 1)
    b = b_ref[...].astype(jnp.float32)                         # (1, C, 1)
    o_ref[...] = (xc * scale + b).astype(o_ref.dtype)


def _gln_stats_kernel(x_ref, mean_ref, inv_ref, acc_s, acc_q, *,
                      eps, count, rem):
    """Tiled stats pass: accumulate sum / sum-of-squares over S tiles.

    grid = (N, S_tiles); S is the reduction ("arbitrary") axis.  Only the
    ragged last tile (if any) is masked, and only here (OOB reads of a partial
    block are not guaranteed zero).
    """
    j = pl.program_id(1)
    nj = pl.num_programs(1)

    @pl.when(j == 0)
    def _():
        acc_s[...] = jnp.zeros_like(acc_s)
        acc_q[...] = jnp.zeros_like(acc_q)

    x = x_ref[...].astype(jnp.float32)                         # (1, C, tS)

    def _acc(xv):
        acc_s[...] = acc_s[...] + jnp.sum(xv, axis=(1, 2), keepdims=True)
        acc_q[...] = acc_q[...] + jnp.sum(xv * xv, axis=(1, 2), keepdims=True)

    if rem == 0:                                               # static branch
        _acc(x)
    else:
        @pl.when(j < nj - 1)
        def _():
            _acc(x)

        @pl.when(j == nj - 1)
        def _():
            lane = lax.broadcasted_iota(jnp.int32, x.shape, 2)
            _acc(jnp.where(lane < rem, x, 0.0))

    @pl.when(j == nj - 1)
    def _():
        inv_cnt = 1.0 / float(count)
        mean = acc_s[...] * inv_cnt
        # TODO(synk): one-pass E[x^2]-E[x]^2 can lose precision if |mean|>>std.
        var = jnp.maximum(acc_q[...] * inv_cnt - mean * mean, 0.0)
        mean_ref[...] = mean
        inv_ref[...] = 1.0 / jnp.sqrt(var + eps)


def _gln_norm_kernel(x_ref, w_ref, b_ref, mean_ref, inv_ref, o_ref):
    """Tiled fused normalize: y = x*(w*inv) + (b - mean*w*inv)."""
    x = x_ref[...].astype(jnp.float32)                         # (1, C, tS)
    mean = mean_ref[...]                                       # (1, 1, 1)
    inv = inv_ref[...]
    scale = w_ref[...].astype(jnp.float32) * inv               # (1, C, 1)
    shift = b_ref[...].astype(jnp.float32) - mean * scale
    o_ref[...] = (x * scale + shift).astype(o_ref.dtype)


# --------------------------------------------------------------------------
# Wrapper
# --------------------------------------------------------------------------

def _round_up(v, m):
    return (v + m - 1) // m * m


def _vmem_capacity_bytes():
    try:
        info = pltpu.get_tpu_info()
        cap = int(getattr(info, "vmem_capacity_bytes", 0))
        if cap > 0:
            return cap
    except Exception:
        pass
    return 64 * 1024 * 1024   # conservative: v7x per-TensorCore VMEM


def _fold_factor(c, s):
    """Smallest g with g | (s/128), (s/g) % 128 == 0 and c*g >= 8 sublanes."""
    if c >= 8 or s % 128 != 0:
        return 1
    m = s // 128                        # g must divide m
    for g in range(1, m + 1):
        if m % g == 0 and c * g >= 8:
            return g
    # No divisor reaches 8 sublanes: take the largest divisor (densest layout).
    # TODO(synk): could instead flatten (C,S) and pad rows to a multiple of 8.
    best = 1
    for g in range(1, m + 1):
        if m % g == 0:
            best = g
    return best


def _gln_single_pass(x3, w3, b3, n, c_eff, s_eff, eps, vmem_limit, ws_budget,
                     per_sample_vmem, per_sample_block):
    # Grid granularity: >= 8 pipelined steps when possible, blocks <= ~8 MiB,
    # double-buffered working set under ws_budget.
    max_bn_vmem = max(1, ws_budget // per_sample_vmem)
    max_bn_blk = max(1, (8 * 1024 * 1024) // max(1, per_sample_block))
    max_bn_grid = max(1, n // 8)
    target = max(1, min(max_bn_vmem, max_bn_blk, max_bn_grid))
    bn = 1
    for d in range(min(target, n), 0, -1):
        if n % d == 0:
            bn = d
            break

    kernel = functools.partial(_gln_fused_kernel, eps=float(eps),
                               count=c_eff * s_eff)
    return pl.pallas_call(
        kernel,
        out_shape=jax.ShapeDtypeStruct((n, c_eff, s_eff), x3.dtype),
        grid=(n // bn,),
        in_specs=[
            pl.BlockSpec((bn, c_eff, s_eff), lambda i: (i, 0, 0)),
            pl.BlockSpec((1, c_eff, 1), lambda i: (0, 0, 0)),
            pl.BlockSpec((1, c_eff, 1), lambda i: (0, 0, 0)),
        ],
        out_specs=pl.BlockSpec((bn, c_eff, s_eff), lambda i: (i, 0, 0)),
        compiler_params=pltpu.CompilerParams(
            dimension_semantics=("parallel",),
            vmem_limit_bytes=vmem_limit),
    )(x3, w3, b3)


def _gln_tiled(x3, w3, b3, n, c_eff, s_eff, eps, vmem_limit, tile_s):
    c_pad = _round_up(c_eff, 8)
    if tile_s is None:
        # ~2 MiB f32 per tile keeps the double-buffered working set small.
        tile_s = (2 * 1024 * 1024) // (c_pad * 4)
    tile_s = max(128, (int(tile_s) // 128) * 128)
    tile_s = int(min(tile_s, _round_up(s_eff, 128)))
    n_tiles = -(-s_eff // tile_s)
    rem = s_eff - (n_tiles - 1) * tile_s
    if rem == tile_s:
        rem = 0     # S divides evenly: no ragged tile, no mask anywhere.

    # Phase 1: per-sample sum / sum-of-squares -> mean, 1/sqrt(var+eps).
    stats_kernel = functools.partial(_gln_stats_kernel, eps=float(eps),
                                     count=c_eff * s_eff, rem=int(rem))
    mean, inv = pl.pallas_call(
        stats_kernel,
        out_shape=(jax.ShapeDtypeStruct((n, 1, 1), jnp.float32),
                   jax.ShapeDtypeStruct((n, 1, 1), jnp.float32)),
        grid=(n, n_tiles),
        in_specs=[pl.BlockSpec((1, c_eff, tile_s), lambda i, j: (i, 0, j))],
        out_specs=(pl.BlockSpec((1, 1, 1), lambda i, j: (i, 0, 0)),
                   pl.BlockSpec((1, 1, 1), lambda i, j: (i, 0, 0))),
        scratch_shapes=[pltpu.VMEM((1, 1, 1), jnp.float32),
                        pltpu.VMEM((1, 1, 1), jnp.float32)],
        compiler_params=pltpu.CompilerParams(
            dimension_semantics=("parallel", "arbitrary"),
            vmem_limit_bytes=vmem_limit),
    )(x3)

    # Phase 2: tiled fused normalize, output written at its true shape
    # (partial last-tile stores are masked by Pallas).
    out = pl.pallas_call(
        _gln_norm_kernel,
        out_shape=jax.ShapeDtypeStruct((n, c_eff, s_eff), x3.dtype),
        grid=(n, n_tiles),
        in_specs=[
            pl.BlockSpec((1, c_eff, tile_s), lambda i, j: (i, 0, j)),
            pl.BlockSpec((1, c_eff, 1), lambda i, j: (0, 0, 0)),
            pl.BlockSpec((1, c_eff, 1), lambda i, j: (0, 0, 0)),
            pl.BlockSpec((1, 1, 1), lambda i, j: (i, 0, 0)),
            pl.BlockSpec((1, 1, 1), lambda i, j: (i, 0, 0)),
        ],
        out_specs=pl.BlockSpec((1, c_eff, tile_s), lambda i, j: (i, 0, j)),
        compiler_params=pltpu.CompilerParams(
            dimension_semantics=("parallel", "parallel"),
            vmem_limit_bytes=vmem_limit),
    )(x3, w3, b3, mean, inv)
    return out


def global_layer_norm(x, weight, bias, eps=1e-8, *, force_tiled=False,
                      tile_s=None):
    """Pallas GlobalLayerNorm. x: [N, C, H, W] or [N, C, L]."""
    orig_shape = x.shape
    n, c = int(x.shape[0]), int(x.shape[1])
    s = int(np.prod(x.shape[2:]))
    x3 = x.reshape(n, c, s)
    w_flat = jnp.asarray(weight, jnp.float32).reshape(c)
    b_flat = jnp.asarray(bias, jnp.float32).reshape(c)

    # Fold (C, S) -> (C*g, S/g) so sublanes are dense when C is small.
    g = _fold_factor(c, s)
    c_eff, s_eff = c * g, s // g
    if g > 1:
        x3 = x3.reshape(n, c_eff, s_eff)       # contiguous reshape (free)
        w_flat = jnp.repeat(w_flat, g)
        b_flat = jnp.repeat(b_flat, g)
    w3 = w_flat.reshape(1, c_eff, 1)
    b3 = b_flat.reshape(1, c_eff, 1)

    # Generation-aware budgets: working set <= min(VMEM/2, 32 MiB);
    # vmem_limit set with margin above it (safe on v7x's 64 MiB/TC).
    cap = _vmem_capacity_bytes()
    vmem_limit = int(min(cap * 3 // 4, 100 * 1024 * 1024))
    ws_budget = int(min(cap // 2, 32 * 1024 * 1024))

    itemsize = jnp.dtype(x.dtype).itemsize
    c_pad = _round_up(c_eff, 8)
    s_pad = _round_up(s_eff, 128)
    per_sample_block = c_pad * s_pad * itemsize                 # raw in block
    # 2x in + 2x out (double-buffered) + f32 temporaries (x cast, xc):
    per_sample_vmem = c_pad * s_pad * (4 * itemsize + 8)

    if per_sample_vmem <= ws_budget and not force_tiled:
        out = _gln_single_pass(x3, w3, b3, n, c_eff, s_eff, eps, vmem_limit,
                               ws_budget, per_sample_vmem, per_sample_block)
    else:
        out = _gln_tiled(x3, w3, b3, n, c_eff, s_eff, eps, vmem_limit, tile_s)

    return out.reshape(orig_shape)


# --------------------------------------------------------------------------
# Reference + tests
# --------------------------------------------------------------------------

def _reference(x, weight, bias, eps=1e-8):
    xf = x.astype(jnp.float32)
    axes = tuple(range(1, x.ndim))
    mean = jnp.mean(xf, axis=axes, keepdims=True)
    var = jnp.mean((xf - mean) ** 2, axis=axes, keepdims=True)
    w = jnp.asarray(weight, jnp.float32).reshape((1,) + tuple(weight.shape))
    b = jnp.asarray(bias, jnp.float32).reshape((1,) + tuple(bias.shape))
    return (w * (xf - mean) / jnp.sqrt(var + eps) + b).astype(x.dtype)


if __name__ == "__main__":
    eps = 1e-8
    key = jax.random.PRNGKey(0)
    k1, k2, k3, k4, k5, k6, k7, k8 = jax.random.split(key, 8)

    # --- Test 1: module config (shape==4): x [2,4,16,16], params as in __init__
    N, C, H, W = 2, 4, 16, 16
    x = jax.random.normal(k1, (N, C, H, W), dtype=jnp.float32)
    weight = jnp.ones((C, 1, 1), jnp.float32)
    bias = jnp.zeros((C, 1, 1), jnp.float32)
    y = jax.block_until_ready(global_layer_norm(x, weight, bias, eps=eps))
    np.testing.assert_allclose(np.asarray(y),
                               np.asarray(_reference(x, weight, bias, eps)),
                               rtol=1e-5, atol=1e-5)

    # --- Test 2: 3D branch, L not a multiple of 128 (no pad needed), random affine
    N2, C2, L2 = 2, 4, 200
    x2 = jax.random.normal(k2, (N2, C2, L2), dtype=jnp.float32)
    w2 = jax.random.normal(k3, (C2, 1), dtype=jnp.float32)
    b2 = jax.random.normal(k4, (C2, 1), dtype=jnp.float32)
    y2 = jax.block_until_ready(global_layer_norm(x2, w2, b2, eps=eps))
    np.testing.assert_allclose(np.asarray(y2),
                               np.asarray(_reference(x2, w2, b2, eps)),
                               rtol=1e-5, atol=1e-5)

    # --- Test 3: N=4, random affine, folded (C,S) -> (8,128)
    N3 = 4
    x3_ = jax.random.normal(k5, (N3, C, H, W), dtype=jnp.float32)
    w3_ = jax.random.normal(k6, (C, 1, 1), dtype=jnp.float32)
    b3_ = jax.random.normal(k7, (C, 1, 1), dtype=jnp.float32)
    y3 = jax.block_until_ready(global_layer_norm(x3_, w3_, b3_, eps=eps))
    np.testing.assert_allclose(np.asarray(y3),
                               np.asarray(_reference(x3_, w3_, b3_, eps)),
                               rtol=1e-5, atol=1e-5)

    # --- Test 4: forced S-tiled two-pass fallback with a ragged last tile
    N4, C4, L4 = 2, 8, 1000
    x4 = jax.random.normal(k2, (N4, C4, L4), dtype=jnp.float32)
    w4 = jax.random.normal(k3, (C4, 1), dtype=jnp.float32)
    b4 = jax.random.normal(k4, (C4, 1), dtype=jnp.float32)
    y4 = jax.block_until_ready(global_layer_norm(x4, w4, b4, eps=eps,
                                                 force_tiled=True, tile_s=256))
    np.testing.assert_allclose(np.asarray(y4),
                               np.asarray(_reference(x4, w4, b4, eps)),
                               rtol=2e-5, atol=2e-5)

    # --- Test 5: larger batch so Bn > 1 samples share one grid block
    N5, C5, H5, W5 = 16, 4, 8, 16
    x5 = jax.random.normal(k8, (N5, C5, H5, W5), dtype=jnp.float32)
    w5 = jax.random.normal(k6, (C5, 1, 1), dtype=jnp.float32)
    b5 = jax.random.normal(k7, (C5, 1, 1), dtype=jnp.float32)
    y5 = jax.block_until_ready(global_layer_norm(x5, w5, b5, eps=eps))
    np.testing.assert_allclose(np.asarray(y5),
                               np.asarray(_reference(x5, w5, b5, eps)),
                               rtol=1e-5, atol=1e-5)

    print("KERNEL_OK")
</pallas_src>

<mosaic_0001>
module attributes {stable_mosaic.version = 11 : i64} {
  func.func @_gln_fused_kernel(%arg0: i32, %arg1: memref<1x8x128xf32, #tpu.memory_space<vmem>>, %arg2: memref<1x8x1xf32, #tpu.memory_space<vmem>>, %arg3: memref<1x8x1xf32, #tpu.memory_space<vmem>>, %arg4: memref<1x8x128xf32, #tpu.memory_space<vmem>>) attributes {dimension_semantics = [#tpu.dimension_semantics<parallel>], iteration_bounds = array<i64: 2>, scalar_prefetch = 0 : i64, scratch_operands = 0 : i64, tpu.core_type = #tpu.core_type<tc>, window_params = [{transform_indices = @transform_0, window_bounds = array<i64: 1, 8, 128>}, {pipeline_mode = #tpu.pipeline_mode<synchronous>, transform_indices = @transform_1, window_bounds = array<i64: 1, 8, 1>}, {pipeline_mode = #tpu.pipeline_mode<synchronous>, transform_indices = @transform_2, window_bounds = array<i64: 1, 8, 1>}, {transform_indices = @transform_3, window_bounds = array<i64: 1, 8, 128>}]} {
    %c0 = arith.constant 0 : index
    %c0_0 = arith.constant 0 : index
    %c0_1 = arith.constant 0 : index
    %0 = vector.load %arg1[%c0, %c0_0, %c0_1] : memref<1x8x128xf32, #tpu.memory_space<vmem>>, vector<1x8x128xf32>
    %cst = arith.constant dense<0.000000e+00> : vector<1x8xf32>
    %1 = vector.multi_reduction <add>, %0, %cst [2] : vector<1x8x128xf32> to vector<1x8xf32>
    %2 = vector.shape_cast %1 : vector<1x8xf32> to vector<1x8x1xf32>
    %cst_2 = arith.constant dense<0.000000e+00> : vector<1x1xf32>
    %3 = vector.multi_reduction <add>, %2, %cst_2 [1] : vector<1x8x1xf32> to vector<1x1xf32>
    %4 = vector.shape_cast %3 : vector<1x1xf32> to vector<1x1x1xf32>
    %cst_3 = arith.constant 9.765625E-4 : f32
    %5 = vector.broadcast %cst_3 : f32 to vector<1x1x1xf32>
    %6 = arith.mulf %4, %5 : vector<1x1x1xf32>
    %7 = vector.broadcast %6 : vector<1x1x1xf32> to vector<1x8x128xf32>
    %8 = arith.subf %0, %7 : vector<1x8x128xf32>
    %9 = arith.mulf %8, %8 : vector<1x8x128xf32>
    %cst_4 = arith.constant dense<0.000000e+00> : vector<1x8xf32>
    %10 = vector.multi_reduction <add>, %9, %cst_4 [2] : vector<1x8x128xf32> to vector<1x8xf32>
    %11 = vector.shape_cast %10 : vector<1x8xf32> to vector<1x8x1xf32>
    %cst_5 = arith.constant dense<0.000000e+00> : vector<1x1xf32>
    %12 = vector.multi_reduction <add>, %11, %cst_5 [1] : vector<1x8x1xf32> to vector<1x1xf32>
    %13 = vector.shape_cast %12 : vector<1x1xf32> to vector<1x1x1xf32>
    %cst_6 = arith.constant 9.765625E-4 : f32
    %14 = vector.broadcast %cst_6 : f32 to vector<1x1x1xf32>
    %15 = arith.mulf %13, %14 : vector<1x1x1xf32>
    %cst_7 = arith.constant 9.99999993E-9 : f32
    %16 = vector.broadcast %cst_7 : f32 to vector<1x1x1xf32>
    %17 = arith.addf %15, %16 : vector<1x1x1xf32>
    %18 = math.sqrt %17 : vector<1x1x1xf32>
    %cst_8 = arith.constant 1.000000e+00 : f32
    %19 = vector.broadcast %cst_8 : f32 to vector<1x1x1xf32>
    %20 = arith.divf %19, %18 : vector<1x1x1xf32>
    %c0_9 = arith.constant 0 : index
    %c0_10 = arith.constant 0 : index
    %c0_11 = arith.constant 0 : index
    %21 = vector.load %arg2[%c0_9, %c0_10, %c0_11] : memref<1x8x1xf32, #tpu.memory_space<vmem>>, vector<1x8x1xf32>
    %22 = vector.broadcast %20 : vector<1x1x1xf32> to vector<1x8x1xf32>
    %23 = arith.mulf %21, %22 : vector<1x8x1xf32>
    %c0_12 = arith.constant 0 : index
    %c0_13 = arith.constant 0 : index
    %c0_14 = arith.constant 0 : index
    %24 = vector.load %arg3[%c0_12, %c0_13, %c0_14] : memref<1x8x1xf32, #tpu.memory_space<vmem>>, vector<1x8x1xf32>
    %25 = vector.broadcast %23 : vector<1x8x1xf32> to vector<1x8x128xf32>
    %26 = arith.mulf %8, %25 : vector<1x8x128xf32>
    %27 = vector.broadcast %24 : vector<1x8x1xf32> to vector<1x8x128xf32>
    %28 = arith.addf %26, %27 : vector<1x8x128xf32>
    %c0_15 = arith.constant 0 : index
    %c0_16 = arith.constant 0 : index
    %c0_17 = arith.constant 0 : index
    %29 = vector.load %arg4[%c0_15, %c0_16, %c0_17] : memref<1x8x128xf32, #tpu.memory_space<vmem>>, vector<1x8x128xf32>
    tpu.vector_store %arg4[%c0_15, %c0_16, %c0_17], %28 {strides = array<i32>} : memref<1x8x128xf32, #tpu.memory_space<vmem>>, vector<1x8x128xf32>,
    return
  }
  func.func @transform_0(%arg0: i32) -> (i32, i32, i32) {
    %c0_i32 = arith.constant 0 : i32
    %c0_i32_0 = arith.constant 0 : i32
    %c0_i32_1 = arith.constant 0 : i32
    return %arg0, %c0_i32, %c0_i32_0 : i32, i32, i32
  }
  func.func @transform_1(%arg0: i32) -> (i32, i32, i32) {
    %c0_i32 = arith.constant 0 : i32
    %c0_i32_0 = arith.constant 0 : i32
    %c0_i32_1 = arith.constant 0 : i32
    %c0_i32_2 = arith.constant 0 : i32
    return %c0_i32, %c0_i32_0, %c0_i32_1 : i32, i32, i32
  }
  func.func @transform_2(%arg0: i32) -> (i32, i32, i32) {
    %c0_i32 = arith.constant 0 : i32
    %c0_i32_0 = arith.constant 0 : i32
    %c0_i32_1 = arith.constant 0 : i32
    %c0_i32_2 = arith.constant 0 : i32
    return %c0_i32, %c0_i32_0, %c0_i32_1 : i32, i32, i32
  }
  func.func @transform_3(%arg0: i32) -> (i32, i32, i32) {
    %c0_i32 = arith.constant 0 : i32
    %c0_i32_0 = arith.constant 0 : i32
    %c0_i32_1 = arith.constant 0 : i32
    return %arg0, %c0_i32, %c0_i32_0 : i32, i32, i32
  }
}

</mosaic_0001>

<bundles_post_ra>
// kernel: tpu_custom_call.1
= control target key start
LH: loop header
LB: loop body
LE: loop exit
PB: predicated region body
PF: predicated region fallthrough
CT: control target
= control target key end

     0   :  { %8 = vsyncpa [#allocation3], 0  ;;  %s534_s0 = inlined_call_operand.vmem [shape: f32[2,8,128], index: 0, kind: input, shape index: {}]   ;;  %s535_s1 = inlined_call_operand.vmem [shape: f32[1,8,1], index: 1, kind: input, shape index: {}]   ;;  %s536_s2 = inlined_call_operand.vmem [shape: f32[1,8,1], index: 2, kind: input, shape index: {}]   ;;  %s537_s3 = inlined_call_operand.hbm [shape: f32[2,8,128], index: 3, kind: output, shape index: {}]  }
   0x1   :  { %10 = vsyncpa [#allocation3 + $0x1], 0  ;;  %s428_s12 = smov 0   ;;  %s430_s13 = smov 0  }
   0x2   :  { %s432_s14 = smov 0   ;;  %s434_s15 = smov 0  }
   0x3 LB: > { %s449_s16 = sadd.s32 4294967295, %s404_s15   ;;  %s286_s17 = sadd.s32 4294967294, %s404_s15   ;;  %s404_s15 = sphi %s434_s15, %s543_s15   ;;  %s400_s14 = sphi %s432_s14, %s542_s14   ;;  %s396_s13 = sphi %s430_s13, %s541_s13   ;;  %s392_s12 = sphi %s428_s12, %s540_s12  }
   0x4   : > { %s453_s18 = sadd.s32 1, %s404_s15   ;;  %s91_s19 = sadd.s32 1, %s400_s14 }
   0x5   : > { %s88_s20 = ssub.s32 %s404_s15, %s453_s18  ;;  %p101_p0 = scmp.ne.s32.totalorder %s400_s14, %s396_s13 }
   0x6   : > { %p89_p1 = scmp.eq.s32.totalorder %s88_s20, 0  ;;  %p102_p2 = scmp.eq.s32.totalorder %s449_s16, 1 }
   0x7   : > { %p107_p3 = scmp.ne.s32.totalorder %s396_s13, %s392_s12  ;;  %p108_p4 = scmp.eq.s32.totalorder %s286_s17, 1 }
   0x8   : > { %s464_s21 = scalar_select %p89_p1, %s400_s14, %s91_s19  }
   0x9   : > { %p466_p5 = por %p102_p2, %p101_p0  ;;  %p470_p6 = por %p108_p4, %p107_p3 }
   0xa   : > { %p289_p7 = scmp.ge.s32.totalorder %s404_s15, 1  ;;  %p139_p8 = scmp.lt.s32.totalorder %s404_s15, 3 }
   0xc   : > { %p140_p9 = pnand %p289_p7, %p139_p8 }
   0xd   : > { %p162_p10 = scmp.lt.s32.totalorder (!%p140_p9), %s449_s16, 1  ;;  %v406_v11 = vmov (!%p140_p9), 0   ;;  %v197_v26 = vld [vmem:[%s535_s1] sm:$0xff] (!%p140_p9)  ;;  %s159_s6 = sand.u32 (!%p140_p9), 1, %s396_s13  }
   0xe   : > { %143 = sbr.rel (%p140_p9) target bundleno = 520 (0x208), region = 32  ;;  %336 = vset.pattern.permute.xlu1 (!%p140_p9), %v406_v11  ;;  %337 = vset.pattern.permute.xlu0 (!%p140_p9), %v406_v11  ;;  %v199_v29 = vld [vmem:[%s536_s2] sm:$0xff] (!%p140_p9)  ;;  %s290_s7 = sshll.u32 (!%p140_p9), %s159_s6, 3 }
   0xf   : > { %s293_s8 = sshll.u32 (!%p140_p9), %s449_s16, 7  ;;  %s161_s9 = scalar_lea.vmem (!%p140_p9), [#allocation2], %s290_s7 }
  0x10   : > { %s227_s10 = sshll.u32 (!%p140_p9), %s161_s9, 4  ;;  %s492_s19 = scalar_lea.hbm (!%p140_p9), %s537_s3, %s293_s8  ;;  %s494_s10 = int_to_ptr.vmem [resolvable:$true] %s227_s10 }
  0x11   : > { %s214_s20 = scalar_lea.sflag (!%p140_p9), [#allocation3], %s159_s6 }
  0x15   : > { %s163_s24 = scalar_select %p162_p10, %s449_s16, 1 }
  0x16   : > { %s407_s16 = smov [#allocation2]  }
  0x17   : > { %s291_s25 = sshll.u32 %s163_s24, 3  ;;  %s342_s24 = scalar_lea.vmem %s494_s10, 128 }
  0x18   : > { %s165_s28 = scalar_lea.vmem %s534_s0, %s291_s25  ;;  %p343_p11 = scmp.ne.s32.totalorder %s494_s10, %s342_s24 }
  0x19   : > { %v166_v0 = vld [vmem:[%s165_s28] sm:$0xff]  ;;  %s346_s25 = sshll.u32 %s407_s16, 4  ;;  %s347_s25 = int_to_ptr.vmem [resolvable:$false] %s346_s25 }
  0x1a   : > { %167 = vadd.xlane.f32.xlu0 %v166_v0  ;;  %p344_p12 = pnand %p343_p11, %p466_p5  ;;  %s348_s26 = scalar_lea.vmem %s347_s25, 256 }
  0x1b   : > { %p349_p0 = scmp.lt.s32.totalorder %s494_s10, %s347_s25  ;;  %p350_p1 = scmp.lt.s32.totalorder %s348_s26, %s342_s24 }
  0x1c   : > { %p345_p13 = pneg %p344_p12 }
  0x1d   : > { %p351_p2 = por %p350_p1, %p349_p0 }
  0x1f   : > { %p352_p3 = pnand %p351_p2, %p345_p13 }
  0xa7   : > { %v168_v1 = vpop.xlane.xlu0 %167 }
  0xa8   : > { %v169_v2 = vrot.slane %v168_v1, 4 }
  0xaa   : > { %v170_v3 = vadd.f32 %v169_v2, %v168_v1 }
  0xac   : > { %v171_v4 = vrot.slane %v170_v3, 2 }
  0xae   : > { %v172_v5 = vadd.f32 %v171_v4, %v170_v3 }
  0xb0   : > { %v173_v6 = vrot.slane %v172_v5, 1 }
  0xb2   : > { %v174_v7 = vadd.f32 %v173_v6, %v172_v5 }
  0xb4   : > { %v175_v8 = vmul.f32 0.0009765625, %v174_v7 }
  0xb6   : > { %v176_v9 = vsub.f32 %v166_v0, %v175_v8 }
  0xb8   : > { %v177_v10 = vmul.f32 %v176_v9, %v176_v9 }
  0xba   : > { %178 = vadd.xlane.f32.xlu0 %v177_v10 }
 0x147   : > { %v179_v12 = vpop.xlane.xlu0 %178 }
 0x148   : > { %v180_v13 = vrot.slane %v179_v12, 4 }
 0x14a   : > { %v181_v14 = vadd.f32 %v180_v13, %v179_v12 }
 0x14c   : > { %v182_v15 = vrot.slane %v181_v14, 2 }
 0x14e   : > { %v183_v16 = vadd.f32 %v182_v15, %v181_v14 }
 0x150   : > { %v184_v17 = vrot.slane %v183_v16, 1 }
 0x152   : > { %v185_v18 = vadd.f32 %v184_v17, %v183_v16 }
 0x154   : > { %v186_v19 = vmul.f32 0.0009765625, %v185_v18 }
 0x156   : > { %v187_v20 = vadd.f32 1e-08, %v186_v19 }
 0x158   : > { %338 = vrsqrt.f32 %v187_v20  ;;  %vm190_vm0 = vcmp.eq.f32.partialorder %v187_v20, inf  ;;  %v193_v23 = vand.u32 2147483648, %v187_v20  ;;  %vm192_vm1 = vcmp.eq.f32.partialorder %v187_v20, 0.0 }
 0x162   : > { %v339_v21 = vpop.eup %338 }
 0x163   : > { %v189_v22 = vmul.f32 %v339_v21, %v187_v20 }
 0x165   : > { %v191_v24 = vsel %vm190_vm0, %v187_v20, %v189_v22 }
 0x166   : > { %v194_v25 = vsel %vm192_vm1, %v193_v23, %v191_v24 }
 0x167   : > { %340 = vrcp.f32 %v194_v25 }
 0x171   : > { %v341_v27 = vpop.eup %340 }
 0x172   : > { %v198_v28 = vmul.f32 %v341_v27, %v197_v26 }
 0x174   : > { %202 = vperm.xlu1 %336, %v198_v28  }
 0x178   : > { %208 = vperm.xlu1 %336, %v199_v29  }
 0x1f3   : > { %v203_v30 = vpop.permute.xlu1 %202 }
 0x1f4   : > { %v205_v31 = vmul.f32 %v203_v30, %v176_v9 }
 0x1f7   : > { %v209_v32 = vpop.permute.xlu1 %208 }
 0x1f8   : > { %v211_v33 = vadd.f32 %v209_v32, %v205_v31 }
 0x1fa   : > { %212 = vst [vmem:[%s161_s9] sm:$0xff] %v211_v33 }
 0x1fb   : > { %355 = shalt.err (!%p352_p3)
}
 0x1fc   : > { %s356_s27 = scalar_lea.hbm %s492_s19, 128  ;;  %s360_s30 = scalar_lea.hbm %s537_s3, 256 }
 0x1fd   : > { %p357_p4 = scmp.ne.s32.totalorder %s492_s19, %s356_s27  ;;  %p361_p9 = scmp.lt.u32.totalorder %s492_s19, %s537_s3 }
 0x1fe   : > { %p362_p10 = scmp.lt.u32.totalorder %s360_s30, %s356_s27  ;;  %p364_p12 = scmp.lt.u32.totalorder %s356_s27, %s492_s19 }
 0x1ff   : > { %p358_p7 = pnand %p357_p4, %p466_p5 }
 0x200   : > { %p363_p11 = por %p362_p10, %p361_p9 }
 0x201   : > { %p359_p8 = pneg %p358_p7 }
 0x202   : > { %p365_p13 = por %p364_p12, %p363_p11 }
 0x204   : > { %p366_p0 = pnand %p365_p13, %p359_p8 }
 0x206   : > { %369 = shalt.err (!%p366_p0)
}
 0x207   : > { %296 = dma.vmem_to_hbm [thread:$0]  (%p466_p5), %s494_s10, 128, %s492_s19, %s214_s20  }
 0x208 PF: > { %p302_p1 = scmp.ge.s32.totalorder %s404_s15, 2  ;;  %s239_s6 = sand.u32 1, %s392_s12  }
 0x209   : > { %s240_s7 = scalar_lea.sflag [#allocation3], %s239_s6 }
 0x20a   : > { %p299_p2 = pnand %p302_p1, %p470_p6 }
 0x20c   : > { %387 = dma.done.wait (!%p299_p2), %s240_s7, 128  }
 0x20d   : > { %389 = vsyncadd (!%p299_p2), %s240_s7, 4294967168  ;;  %p13_p3 = scmp.ge.s32.totalorder %s453_s18, 4   ;;  %s540_s12 = smov %s396_s13 }
 0x20e   : > { %s541_s13 = smov %s400_s14  ;;  %s542_s14 = smov %s464_s21 }
 0x20f   : > { %s543_s15 = smov %s453_s18  ;;  %15 = sbr.rel (!%p13_p3) target bundleno = 3 (0x3), region = 67 }
 0x216   :  { %245 = vsyncpa [#allocation3], 1 }
 0x217   :  { %247 = vsyncpa [#allocation3 + $0x1], 1 }

</bundles_post_ra>
